<compile_context>
chip_gen: v5e
topology: v5e:2x2
jax: 0.10.0
libtpu: 0.0.40
codegen_flags: <defaults>
</compile_context>

<pallas_src>
import jax
import jax.numpy as jnp
from jax.experimental import pallas as pl
from jax.experimental.pallas import tpu as pltpu

BN_EPS = 1e-5


def make_dcn_kernel(num_cross_layers, num_mlp_layers):
    """Builds a Pallas kernel closed over the (static) layer counts."""

    def kernel(*refs):
        # refs = [embed, wc, bc, W_0, b_0, ..., W_{L-1}, b_{L-1},
        #         wl_cross8, wl_mlp8, bl, out]
        embed_ref, wc_ref, bc_ref = refs[0], refs[1], refs[2]
        mlp_refs = refs[3:3 + 2 * num_mlp_layers]
        wlc_ref, wlm_ref, bl_ref, out_ref = refs[3 + 2 * num_mlp_layers:]

        x0 = embed_ref[...]                              # (TILE_B, D0), f32

        # ---------------- Cross network (VPU mul + XLU lane-reduce) ----------------
        x = x0
        for i in range(num_cross_layers):
            wi = wc_ref[i:i + 1, :]                      # (1, D0)
            bi = bc_ref[i:i + 1, :]                      # (1, D0)
            # Linear(D0 -> 1, bias=False): xw[b] = sum_d x[b, d] * w[d]
            xw = jnp.sum(x * wi, axis=-1, keepdims=True)  # (TILE_B, 1)
            x = x0 * xw + bi + x
            # DFALayer: identity in the forward pass.

        # ---------------- MLP tower (BN pre-folded into W/b) ----------------
        h = x0
        for l in range(num_mlp_layers):
            W = mlp_refs[2 * l][...]                     # (in, out), BN-folded
            b = mlp_refs[2 * l + 1][...]                 # (1, out),  BN-folded
            h = jnp.dot(h, W, preferred_element_type=jnp.float32) + b
            h = jnp.maximum(h, 0.0)                      # ReLU; Dropout = identity.

        # ---------------- Final linear on concat([x_cross, h]) ----------------
        # concat is avoided by splitting the head weights; the projection is done as
        # two rhs-transposed matmuls (A (8,K) · Bᵀ (K,TILE_B)) so the logits come out
        # lane-major (batch on lanes) and the output store is full-lane dense.
        dn = (((1,), (1,)), ((), ()))                    # contract last dims (A @ Bᵀ)
        p8 = (jax.lax.dot_general(wlc_ref[...], x, dn,
                                  preferred_element_type=jnp.float32)
              + jax.lax.dot_general(wlm_ref[...], h, dn,
                                    preferred_element_type=jnp.float32))
        # Rows 1..7 of the head weights are zero padding; row 0 holds the real head.
        p = p8[0:1, :] + bl_ref[...]                     # (1, TILE_B)
        out_ref[...] = jax.nn.sigmoid(p)

    return kernel


def dcn_pallas_forward(embed_x, params, num_cross_layers, mlp_dims, tile_b=128):
    """embed_x: (B, D0) float32 — flattened embeddings."""
    B, D0 = embed_x.shape
    num_mlp_layers = len(mlp_dims)
    kernel = make_dcn_kernel(num_cross_layers, num_mlp_layers)

    # Pad the batch to a multiple of the tile (padded rows are sliced off at the end).
    n_tiles = pl.cdiv(B, tile_b)
    b_pad = n_tiles * tile_b
    if b_pad != B:
        embed_x = jnp.pad(embed_x, ((0, b_pad - B), (0, 0)))

    weight_ops = [params["wc"], params["bc"]]
    for l in range(num_mlp_layers):
        weight_ops.append(params["mlp_Wf"][l])
        weight_ops.append(params["mlp_bf"][l])
    weight_ops += [params["wl_cross8"], params["wl_mlp8"], params["bl"]]

    def const_spec(a):
        # Full-array block + constant index_map -> fetched once, VMEM-resident.
        return pl.BlockSpec(tuple(a.shape), lambda i: (0,) * a.ndim)

    in_specs = ([pl.BlockSpec((tile_b, D0), lambda i: (i, 0))]
                + [const_spec(a) for a in weight_ops])
    out_spec = pl.BlockSpec((1, tile_b), lambda i: (0, i))

    out = pl.pallas_call(
        kernel,
        out_shape=jax.ShapeDtypeStruct((1, b_pad), jnp.float32),
        grid=(n_tiles,),
        in_specs=in_specs,
        out_specs=out_spec,
        compiler_params=pltpu.CompilerParams(
            dimension_semantics=("parallel",),
            vmem_limit_bytes=32 * 1024 * 1024,
        ),
    )(embed_x, *weight_ops)
    return out[0, :B]                                    # squeeze(1) + unpad


# ----------------------------------------------------------------------------
# Parameter setup (deterministic, in-script) and plain-JAX reference.
# ----------------------------------------------------------------------------
def init_params(key, field_dims, embed_dim, num_cross_layers, mlp_dims):
    num_fields = len(field_dims)
    D0 = num_fields * embed_dim
    keys = jax.random.split(key, 8 + 4 * len(mlp_dims))
    ki = iter(keys)

    params = {}
    params["offsets"] = jnp.asarray(
        [0] + list(jnp.cumsum(jnp.asarray(field_dims[:-1])).tolist()), dtype=jnp.int32
    )
    params["emb_table"] = 0.1 * jax.random.normal(
        next(ki), (sum(field_dims), embed_dim), dtype=jnp.float32
    )

    # Cross network: w_i (D0,) stacked -> (L, D0); b_i nonzero for a non-trivial test.
    params["wc"] = 0.1 * jax.random.normal(next(ki), (num_cross_layers, D0), jnp.float32)
    params["bc"] = 0.05 * jax.random.normal(next(ki), (num_cross_layers, D0), jnp.float32)

    # MLP layers: raw params (for the reference) and BN-folded params (for the kernel).
    mlp_W, mlp_P, mlp_Wf, mlp_bf = [], [], [], []
    in_dim = D0
    for out_dim in mlp_dims:
        W = (1.0 / jnp.sqrt(in_dim)) * jax.random.normal(next(ki), (in_dim, out_dim), jnp.float32)
        bias = 0.05 * jax.random.normal(next(ki), (out_dim,), jnp.float32)
        gamma = 1.0 + 0.1 * jax.random.normal(next(ki), (out_dim,), jnp.float32)
        beta = 0.05 * jax.random.normal(next(ki), (out_dim,), jnp.float32)
        rmean = 0.05 * jax.random.normal(jax.random.fold_in(key, 7 * out_dim + 1),
                                         (out_dim,), jnp.float32)
        rvar = 1.0 + 0.1 * jnp.abs(jax.random.normal(jax.random.fold_in(key, out_dim),
                                                     (out_dim,), jnp.float32))
        mlp_W.append(W)
        mlp_P.append(jnp.stack([bias, gamma, beta, rmean, rvar], axis=0))   # (5, out)
        # Fold eval-mode BatchNorm into the Linear: y = (hW + bias - rmean)*s*gamma + beta
        scale = gamma / jnp.sqrt(rvar + BN_EPS)                              # (out,)
        mlp_Wf.append(W * scale[None, :])                                    # (in, out)
        mlp_bf.append(((bias - rmean) * scale + beta)[None, :])              # (1, out)
        in_dim = out_dim
    params["mlp_W"], params["mlp_P"] = mlp_W, mlp_P
    params["mlp_Wf"], params["mlp_bf"] = mlp_Wf, mlp_bf

    # Final linear over concat([cross (D0), mlp (Dm)]) -> 1, split in two and stored as
    # (8, K) rows (row 0 real, rows 1..7 zero) so the head matmul has well-formed tiles.
    Dm = mlp_dims[-1]
    wl = (1.0 / jnp.sqrt(D0 + Dm)) * jax.random.normal(next(ki), (D0 + Dm, 1), jnp.float32)
    params["wl"] = wl
    params["wl_cross8"] = jnp.zeros((8, D0), jnp.float32).at[0, :].set(wl[:D0, 0])
    params["wl_mlp8"] = jnp.zeros((8, Dm), jnp.float32).at[0, :].set(wl[D0:, 0])
    params["bl"] = 0.05 * jax.random.normal(next(ki), (1, 1), jnp.float32)
    return params


def embed_lookup(x_idx, params):
    """Plain-JAX glue: FeaturesEmbedding + flatten. x_idx: (B, F) int32."""
    idx = x_idx + params["offsets"][None, :]
    emb = params["emb_table"][idx]               # (B, F, E)
    B = x_idx.shape[0]
    return emb.reshape(B, -1)                    # (B, D0)


def reference_forward(x_idx, params, num_cross_layers, mlp_dims):
    """Unfused, unfolded reference matching the PyTorch module in eval mode."""
    x0 = embed_lookup(x_idx, params)
    x = x0
    for i in range(num_cross_layers):
        xw = jnp.sum(x * params["wc"][i][None, :], axis=-1, keepdims=True)
        x = x0 * xw + params["bc"][i][None, :] + x
    h = x0
    for l in range(len(mlp_dims)):
        W = params["mlp_W"][l]
        bias, gamma, beta, rmean, rvar = [params["mlp_P"][l][k] for k in range(5)]
        h = h @ W + bias
        h = gamma * (h - rmean) / jnp.sqrt(rvar + BN_EPS) + beta
        h = jnp.maximum(h, 0.0)
    stack = jnp.concatenate([x, h], axis=1)
    p = stack @ params["wl"] + params["bl"]
    return jax.nn.sigmoid(p)[:, 0]


if __name__ == "__main__":
    # Small shapes consistent with the module's forward contract.
    field_dims = (4, 5, 6, 7)        # num_fields = 4
    embed_dim = 8                    # -> embed_output_dim D0 = 32
    num_cross_layers = 2
    mlp_dims = (32, 16)
    batch = 300                      # non-multiple of tile -> exercises padding + grid
    tile_b = 128                     # multiple of 128 (MXU/lane aligned on all chips)

    key = jax.random.PRNGKey(0)
    k_params, k_x = jax.random.split(key)
    params = init_params(k_params, field_dims, embed_dim, num_cross_layers, mlp_dims)

    # Long tensor (batch, num_fields): each field index < field_dims[f].
    maxes = jnp.asarray(field_dims, dtype=jnp.int32)[None, :]
    x_idx = (jax.random.randint(k_x, (batch, len(field_dims)), 0, 10_000, jnp.int32)
             % maxes).astype(jnp.int32)

    embed_x = embed_lookup(x_idx, params)        # glue: gather + flatten
    out = dcn_pallas_forward(embed_x, params, num_cross_layers, mlp_dims, tile_b=tile_b)
    out = jax.block_until_ready(out)

    ref = reference_forward(x_idx, params, num_cross_layers, mlp_dims)
    assert out.shape == (batch,)
    assert jnp.allclose(out, ref, atol=5e-5, rtol=1e-4), (out, ref)
    print("KERNEL_OK")
</pallas_src>

<mosaic_0001>
module attributes {stable_mosaic.version = 11 : i64} {
  func.func @kernel(%arg0: i32, %arg1: memref<128x32xf32, #tpu.memory_space<vmem>>, %arg2: memref<2x32xf32, #tpu.memory_space<vmem>>, %arg3: memref<2x32xf32, #tpu.memory_space<vmem>>, %arg4: memref<32x32xf32, #tpu.memory_space<vmem>>, %arg5: memref<1x32xf32, #tpu.memory_space<vmem>>, %arg6: memref<32x16xf32, #tpu.memory_space<vmem>>, %arg7: memref<1x16xf32, #tpu.memory_space<vmem>>, %arg8: memref<8x32xf32, #tpu.memory_space<vmem>>, %arg9: memref<8x16xf32, #tpu.memory_space<vmem>>, %arg10: memref<1x1xf32, #tpu.memory_space<vmem>>, %arg11: memref<1x128xf32, #tpu.memory_space<vmem>>) attributes {dimension_semantics = [#tpu.dimension_semantics<parallel>], iteration_bounds = array<i64: 3>, scalar_prefetch = 0 : i64, scratch_operands = 0 : i64, tpu.core_type = #tpu.core_type<tc>, window_params = [{transform_indices = @transform_0, window_bounds = array<i64: 128, 32>}, {pipeline_mode = #tpu.pipeline_mode<synchronous>, transform_indices = @transform_1, window_bounds = array<i64: 2, 32>}, {pipeline_mode = #tpu.pipeline_mode<synchronous>, transform_indices = @transform_2, window_bounds = array<i64: 2, 32>}, {pipeline_mode = #tpu.pipeline_mode<synchronous>, transform_indices = @transform_3, window_bounds = array<i64: 32, 32>}, {pipeline_mode = #tpu.pipeline_mode<synchronous>, transform_indices = @transform_4, window_bounds = array<i64: 1, 32>}, {pipeline_mode = #tpu.pipeline_mode<synchronous>, transform_indices = @transform_5, window_bounds = array<i64: 32, 16>}, {pipeline_mode = #tpu.pipeline_mode<synchronous>, transform_indices = @transform_6, window_bounds = array<i64: 1, 16>}, {pipeline_mode = #tpu.pipeline_mode<synchronous>, transform_indices = @transform_7, window_bounds = array<i64: 8, 32>}, {pipeline_mode = #tpu.pipeline_mode<synchronous>, transform_indices = @transform_8, window_bounds = array<i64: 8, 16>}, {pipeline_mode = #tpu.pipeline_mode<synchronous>, transform_indices = @transform_9, window_bounds = array<i64: 1, 1>}, {transform_indices = @transform_10, window_bounds = array<i64: 1, 128>}]} {
    %c0 = arith.constant 0 : index
    %c0_0 = arith.constant 0 : index
    %0 = vector.load %arg1[%c0, %c0_0] : memref<128x32xf32, #tpu.memory_space<vmem>>, vector<128x32xf32>
    %c0_1 = arith.constant 0 : index
    %c0_2 = arith.constant 0 : index
    %1 = vector.load %arg2[%c0_1, %c0_2] : memref<2x32xf32, #tpu.memory_space<vmem>>, vector<1x32xf32>
    %c0_3 = arith.constant 0 : index
    %c0_4 = arith.constant 0 : index
    %2 = vector.load %arg3[%c0_3, %c0_4] : memref<2x32xf32, #tpu.memory_space<vmem>>, vector<1x32xf32>
    %3 = vector.broadcast %1 : vector<1x32xf32> to vector<128x32xf32>
    %4 = arith.mulf %0, %3 : vector<128x32xf32>
    %cst = arith.constant dense<0.000000e+00> : vector<128xf32>
    %5 = vector.multi_reduction <add>, %4, %cst [1] : vector<128x32xf32> to vector<128xf32>
    %6 = vector.shape_cast %5 : vector<128xf32> to vector<128x1xf32>
    %7 = vector.broadcast %6 : vector<128x1xf32> to vector<128x32xf32>
    %8 = arith.mulf %0, %7 : vector<128x32xf32>
    %9 = vector.broadcast %2 : vector<1x32xf32> to vector<128x32xf32>
    %10 = arith.addf %8, %9 : vector<128x32xf32>
    %11 = arith.addf %10, %0 : vector<128x32xf32>
    %c1 = arith.constant 1 : index
    %c0_5 = arith.constant 0 : index
    %12 = vector.load %arg2[%c1, %c0_5] : memref<2x32xf32, #tpu.memory_space<vmem>>, vector<1x32xf32>
    %c1_6 = arith.constant 1 : index
    %c0_7 = arith.constant 0 : index
    %13 = vector.load %arg3[%c1_6, %c0_7] : memref<2x32xf32, #tpu.memory_space<vmem>>, vector<1x32xf32>
    %14 = vector.broadcast %12 : vector<1x32xf32> to vector<128x32xf32>
    %15 = arith.mulf %11, %14 : vector<128x32xf32>
    %cst_8 = arith.constant dense<0.000000e+00> : vector<128xf32>
    %16 = vector.multi_reduction <add>, %15, %cst_8 [1] : vector<128x32xf32> to vector<128xf32>
    %17 = vector.shape_cast %16 : vector<128xf32> to vector<128x1xf32>
    %18 = vector.broadcast %17 : vector<128x1xf32> to vector<128x32xf32>
    %19 = arith.mulf %0, %18 : vector<128x32xf32>
    %20 = vector.broadcast %13 : vector<1x32xf32> to vector<128x32xf32>
    %21 = arith.addf %19, %20 : vector<128x32xf32>
    %22 = arith.addf %21, %11 : vector<128x32xf32>
    %c0_9 = arith.constant 0 : index
    %c0_10 = arith.constant 0 : index
    %23 = vector.load %arg4[%c0_9, %c0_10] : memref<32x32xf32, #tpu.memory_space<vmem>>, vector<32x32xf32>
    %c0_11 = arith.constant 0 : index
    %c0_12 = arith.constant 0 : index
    %24 = vector.load %arg5[%c0_11, %c0_12] : memref<1x32xf32, #tpu.memory_space<vmem>>, vector<1x32xf32>
    %cst_13 = arith.constant dense<0.000000e+00> : vector<128x32xf32>
    %25 = tpu.matmul %0, %23, %cst_13 {dimension_numbers = #tpu.dot_dimension_numbers<[1], [0], [0], [1], [0, 0, 1, 1], [], []>} : vector<128x32xf32>, vector<32x32xf32>, vector<128x32xf32> -> vector<128x32xf32>
    %26 = vector.broadcast %24 : vector<1x32xf32> to vector<128x32xf32>
    %27 = arith.addf %25, %26 : vector<128x32xf32>
    %cst_14 = arith.constant 0.000000e+00 : f32
    %28 = vector.broadcast %cst_14 : f32 to vector<128x32xf32>
    %29 = arith.maximumf %27, %28 : vector<128x32xf32>
    %c0_15 = arith.constant 0 : index
    %c0_16 = arith.constant 0 : index
    %30 = vector.load %arg6[%c0_15, %c0_16] : memref<32x16xf32, #tpu.memory_space<vmem>>, vector<32x16xf32>
    %c0_17 = arith.constant 0 : index
    %c0_18 = arith.constant 0 : index
    %31 = vector.load %arg7[%c0_17, %c0_18] : memref<1x16xf32, #tpu.memory_space<vmem>>, vector<1x16xf32>
    %cst_19 = arith.constant dense<0.000000e+00> : vector<128x16xf32>
    %32 = tpu.matmul %29, %30, %cst_19 {dimension_numbers = #tpu.dot_dimension_numbers<[1], [0], [0], [1], [0, 0, 1, 1], [], []>} : vector<128x32xf32>, vector<32x16xf32>, vector<128x16xf32> -> vector<128x16xf32>
    %33 = vector.broadcast %31 : vector<1x16xf32> to vector<128x16xf32>
    %34 = arith.addf %32, %33 : vector<128x16xf32>
    %cst_20 = arith.constant 0.000000e+00 : f32
    %35 = vector.broadcast %cst_20 : f32 to vector<128x16xf32>
    %36 = arith.maximumf %34, %35 : vector<128x16xf32>
    %c0_21 = arith.constant 0 : index
    %c0_22 = arith.constant 0 : index
    %37 = vector.load %arg8[%c0_21, %c0_22] : memref<8x32xf32, #tpu.memory_space<vmem>>, vector<8x32xf32>
    %cst_23 = arith.constant dense<0.000000e+00> : vector<8x128xf32>
    %38 = tpu.matmul %37, %22, %cst_23 {dimension_numbers = #tpu.dot_dimension_numbers<[1], [1], [0], [0], [0, 0, 1, 0], [], []>} : vector<8x32xf32>, vector<128x32xf32>, vector<8x128xf32> -> vector<8x128xf32>
    %c0_24 = arith.constant 0 : index
    %c0_25 = arith.constant 0 : index
    %39 = vector.load %arg9[%c0_24, %c0_25] : memref<8x16xf32, #tpu.memory_space<vmem>>, vector<8x16xf32>
    %cst_26 = arith.constant dense<0.000000e+00> : vector<8x128xf32>
    %40 = tpu.matmul %39, %36, %cst_26 {dimension_numbers = #tpu.dot_dimension_numbers<[1], [1], [0], [0], [0, 0, 1, 0], [], []>} : vector<8x16xf32>, vector<128x16xf32>, vector<8x128xf32> -> vector<8x128xf32>
    %41 = arith.addf %38, %40 : vector<8x128xf32>
    %42 = vector.extract_strided_slice %41 {offsets = [0, 0], sizes = [1, 128], strides = [1, 1]} : vector<8x128xf32> to vector<1x128xf32>
    %c0_27 = arith.constant 0 : index
    %c0_28 = arith.constant 0 : index
    %43 = vector.load %arg10[%c0_27, %c0_28] : memref<1x1xf32, #tpu.memory_space<vmem>>, vector<1x1xf32>
    %44 = vector.broadcast %43 : vector<1x1xf32> to vector<1x128xf32>
    %45 = arith.addf %42, %44 : vector<1x128xf32>
    %46 = arith.negf %45 : vector<1x128xf32>
    %47 = math.exp %46 : vector<1x128xf32>
    %cst_29 = arith.constant 1.000000e+00 : f32
    %48 = vector.broadcast %cst_29 : f32 to vector<1x128xf32>
    %49 = arith.addf %48, %47 : vector<1x128xf32>
    %50 = arith.divf %48, %49 : vector<1x128xf32>
    %c0_30 = arith.constant 0 : index
    %c0_31 = arith.constant 0 : index
    %51 = vector.load %arg11[%c0_30, %c0_31] : memref<1x128xf32, #tpu.memory_space<vmem>>, vector<1x128xf32>
    tpu.vector_store %arg11[%c0_30, %c0_31], %50 {strides = array<i32>} : memref<1x128xf32, #tpu.memory_space<vmem>>, vector<1x128xf32>,
    return
  }
  func.func @transform_0(%arg0: i32) -> (i32, i32) {
    %c0_i32 = arith.constant 0 : i32
    %c0_i32_0 = arith.constant 0 : i32
    return %arg0, %c0_i32 : i32, i32
  }
  func.func @transform_1(%arg0: i32) -> (i32, i32) {
    %c0_i32 = arith.constant 0 : i32
    %c0_i32_0 = arith.constant 0 : i32
    %c0_i32_1 = arith.constant 0 : i32
    return %c0_i32, %c0_i32_0 : i32, i32
  }
  func.func @transform_2(%arg0: i32) -> (i32, i32) {
    %c0_i32 = arith.constant 0 : i32
    %c0_i32_0 = arith.constant 0 : i32
    %c0_i32_1 = arith.constant 0 : i32
    return %c0_i32, %c0_i32_0 : i32, i32
  }
  func.func @transform_3(%arg0: i32) -> (i32, i32) {
    %c0_i32 = arith.constant 0 : i32
    %c0_i32_0 = arith.constant 0 : i32
    %c0_i32_1 = arith.constant 0 : i32
    return %c0_i32, %c0_i32_0 : i32, i32
  }
  func.func @transform_4(%arg0: i32) -> (i32, i32) {
    %c0_i32 = arith.constant 0 : i32
    %c0_i32_0 = arith.constant 0 : i32
    %c0_i32_1 = arith.constant 0 : i32
    return %c0_i32, %c0_i32_0 : i32, i32
  }
  func.func @transform_5(%arg0: i32) -> (i32, i32) {
    %c0_i32 = arith.constant 0 : i32
    %c0_i32_0 = arith.constant 0 : i32
    %c0_i32_1 = arith.constant 0 : i32
    return %c0_i32, %c0_i32_0 : i32, i32
  }
  func.func @transform_6(%arg0: i32) -> (i32, i32) {
    %c0_i32 = arith.constant 0 : i32
    %c0_i32_0 = arith.constant 0 : i32
    %c0_i32_1 = arith.constant 0 : i32
    return %c0_i32, %c0_i32_0 : i32, i32
  }
  func.func @transform_7(%arg0: i32) -> (i32, i32) {
    %c0_i32 = arith.constant 0 : i32
    %c0_i32_0 = arith.constant 0 : i32
    %c0_i32_1 = arith.constant 0 : i32
    return %c0_i32, %c0_i32_0 : i32, i32
  }
  func.func @transform_8(%arg0: i32) -> (i32, i32) {
    %c0_i32 = arith.constant 0 : i32
    %c0_i32_0 = arith.constant 0 : i32
    %c0_i32_1 = arith.constant 0 : i32
    return %c0_i32, %c0_i32_0 : i32, i32
  }
  func.func @transform_9(%arg0: i32) -> (i32, i32) {
    %c0_i32 = arith.constant 0 : i32
    %c0_i32_0 = arith.constant 0 : i32
    %c0_i32_1 = arith.constant 0 : i32
    return %c0_i32, %c0_i32_0 : i32, i32
  }
  func.func @transform_10(%arg0: i32) -> (i32, i32) {
    %c0_i32 = arith.constant 0 : i32
    %c0_i32_0 = arith.constant 0 : i32
    return %c0_i32, %arg0 : i32, i32
  }
}

</mosaic_0001>

<bundles_post_ra>
// kernel: tpu_custom_call.1
= control target key start
LH: loop header
LB: loop body
LE: loop exit
PB: predicated region body
PF: predicated region fallthrough
CT: control target
= control target key end

     0   :  { %s1925_s0 = inlined_call_operand.vmem [shape: f32[384,32], index: 0, kind: input, shape index: {}]   ;;  %s1926_s1 = inlined_call_operand.vmem [shape: f32[2,32], index: 1, kind: input, shape index: {}]   ;;  %s1927_s2 = inlined_call_operand.vmem [shape: f32[2,32], index: 2, kind: input, shape index: {}]   ;;  %s1928_s3 = inlined_call_operand.vmem [shape: f32[32,32], index: 3, kind: input, shape index: {}]   ;;  %s1929_s4 = inlined_call_operand.vmem [shape: f32[1,32], index: 4, kind: input, shape index: {}]   ;;  %s1930_s5 = inlined_call_operand.vmem [shape: f32[32,16], index: 5, kind: input, shape index: {}]   ;;  %s1931_s6 = inlined_call_operand.vmem [shape: f32[1,16], index: 6, kind: input, shape index: {}]   ;;  %s1932_s7 = inlined_call_operand.vmem [shape: f32[8,32], index: 7, kind: input, shape index: {}]   ;;  %s1933_s8 = inlined_call_operand.vmem [shape: f32[8,16], index: 8, kind: input, shape index: {}]   ;;  %s1934_s9 = inlined_call_operand.<no memory space> [shape: f32[1,1], index: 9, kind: input, shape index: {}]   ;;  %s1935_s10 = inlined_call_operand.hbm [shape: f32[1,384], index: 10, kind: output, shape index: {}]  }
   0x1   :  { %v15_v0 = vstv %s1934_s9 }
   0x2   :  { %16 = vst [vmem:[#allocation2] sm:$0x1] %v15_v0 }
   0x3   :  { %17 = vsyncpa [#allocation4], 0 }
   0x4   :  { %19 = vsyncpa [#allocation4 + $0x1], 0  ;;  %s1375_s15 = smov 0   ;;  %s1377_s16 = smov 0  }
   0x5   :  { %s1379_s17 = smov 0   ;;  %s1381_s18 = smov 0  }
   0x6 LB: > { %s1396_s9 = sadd.s32 4294967295, %s1314_s18   ;;  %s1125_s19 = sadd.s32 4294967294, %s1314_s18   ;;  %s1314_s18 = sphi %s1381_s18, %s1941_s18   ;;  %s1310_s17 = sphi %s1379_s17, %s1940_s17   ;;  %s1306_s16 = sphi %s1377_s16, %s1939_s16   ;;  %s1302_s15 = sphi %s1375_s15, %s1938_s15  }
   0x7   : > { %s1400_s20 = sadd.s32 1, %s1314_s18   ;;  %s247_s21 = sadd.s32 1, %s1310_s17 }
   0x8   : > { %s244_s22 = ssub.s32 %s1314_s18, %s1400_s20  ;;  %p257_p0 = scmp.ne.s32.totalorder %s1310_s17, %s1306_s16 }
   0x9   : > { %p245_p1 = scmp.eq.s32.totalorder %s244_s22, 0  ;;  %p258_p2 = scmp.eq.s32.totalorder %s1396_s9, 2 }
   0xa   : > { %p263_p3 = scmp.ne.s32.totalorder %s1306_s16, %s1302_s15  ;;  %p264_p4 = scmp.eq.s32.totalorder %s1125_s19, 2 }
   0xb   : > { %s1411_s23 = scalar_select %p245_p1, %s1310_s17, %s247_s21  }
   0xc   : > { %p1413_p5 = por %p258_p2, %p257_p0  ;;  %p1417_p6 = por %p264_p4, %p263_p3 }
   0xd   : > { %p1128_p7 = scmp.ge.s32.totalorder %s1314_s18, 1  ;;  %p318_p8 = scmp.lt.s32.totalorder %s1314_s18, 4 }
   0xf   : > { %p319_p9 = pnand %p1128_p7, %p318_p8 }
  0x10   : > { %s1129_s30 = sshll.u32 (!%p319_p9), %s1396_s9, 4  ;;  %s353_s27 = sand.u32 (!%p319_p9), 1, %s1306_s16  }
  0x11   : > { %322 = sbr.rel (%p319_p9) target bundleno = 640 (0x280), region = 60  ;;  %p356_p10 = scmp.lt.s32.totalorder (!%p319_p9), %s1129_s30, 47 }
  0x12   : > { %s354_s11 = scalar_lea.vmem (!%p319_p9), [#allocation3], %s353_s27  ;;  %s1058_s14 = scalar_lea.sflag (!%p319_p9), [#allocation4], %s353_s27 }
  0x13   : > { %s1068_s12 = sshll.u32 (!%p319_p9), %s354_s11, 4  ;;  %s1272_s26 = scalar_lea.hbm (!%p319_p9), %s1935_s10, 3  ;;  %s1069_s12 = int_to_ptr.vmem [resolvable:$true] %s1068_s12 }
  0x16   : > { %v613_v1 = vld [vmem:[%s1928_s3 + $0x18] sm:$0xff]  ;;  %v612_v2 = vld [vmem:[%s1928_s3 + $0x10] sm:$0xff]  ;;  %v611_v3 = vld [vmem:[%s1928_s3 + $0x8] sm:$0xff]  ;;  %s1943_s30 = smov (!%p356_p10, %s1129_s30), 47  ;;  %vm396_vm0 = vcmask 261120   ;;  %vm886_vm1 = vcmask 130048  }
  0x17   : > { %678 = vmatpush.msra.mxu0 %v613_v1  ;;  %v610_v4 = vld [vmem:[%s1928_s3] sm:$0xff]  ;;  %s1130_s22 = sshll.u32 %s1943_s30, 3  ;;  %v750_v50 = vld [vmem:[%s1930_s5 + $0x18] sm:$0xff]  ;;  %v749_v51 = vld [vmem:[%s1930_s5 + $0x10] sm:$0xff]  ;;  %s1066_s30 = scalar_lea.hbm %s1935_s10, %s1396_s9 }
  0x18   : > { %v1439_v5 = vld [vmem:[%s1926_s1] ss:$0 sm:$0xff]  ;;  %s1444_s28 = scalar_lea.vmem %s1925_s0, %s1130_s22  ;;  %815 = vmatpush.msra.mxu1 %v750_v50  ;;  %v748_v52 = vld [vmem:[%s1930_s5 + $0x8] sm:$0xff]  ;;  %v1591_v61 = vld [vmem:[%s1926_s1 + $0x1] ss:$0 sm:$0xff]  ;;  %s1070_s13 = sshll.u32 %s1066_s30, 4  ;;  %s1071_s13 = int_to_ptr.hbm [resolvable:$true] %s1070_s13 }
  0x19   : > { %679 = vmatpush.msra.mxu0 %v612_v2  ;;  %v1447_v6 = vld [vmem:[%s1444_s28] sm:$0xff]  ;;  %v1450_v7 = vld [vmem:[%s1444_s28 + $0x78] sm:$0xff]  ;;  %v1457_v9 = vld [vmem:[%s1444_s28 + $0x68] sm:$0xff]  ;;  %s1266_s9 = sshra.s32 %s1071_s13, 4  ;;  %s1267_s9 = int_to_ptr.hbm [resolvable:$true] %s1266_s9 }
  0x1a   : > { %v395_v8 = vmul.f32 %v1439_v5, %v1450_v7  ;;  %v1460_v10 = vld [vmem:[%s1444_s28 + $0x70] sm:$0xff]  ;;  %v393_v11 = vmul.f32 %v1439_v5, %v1457_v9  ;;  %v1465_v12 = vld [vmem:[%s1444_s28 + $0x58] sm:$0xff]  ;;  %v1469_v14 = vld [vmem:[%s1444_s28 + $0x60] sm:$0xff]  ;;  %816 = vmatpush.msra.mxu1 %v749_v51  ;;  %s1268_s19 = scalar_lea.hbm %s1267_s9, 1  ;;  %p1273_p0 = scmp.lt.s32.totalorder %s1267_s9, %s1935_s10 }
  0x1b   : > { %680 = vmatpush.msra.mxu0 %v611_v3  ;;  %v391_v15 = vmul.f32 %v1439_v5, %v1465_v12  ;;  %v1475_v17 = vld [vmem:[%s1444_s28 + $0x50] sm:$0xff]  ;;  %v394_v18 = vmul.f32 %v1439_v5, %v1460_v10  ;;  %v1481_v20 = vld [vmem:[%s1444_s28 + $0x8] sm:$0xff]  ;;  %v392_v21 = vmul.f32 %v1439_v5, %v1469_v14  ;;  %v1496_v27 = vld [vmem:[%s1444_s28 + $0x40] sm:$0xff]  ;;  %p1269_p11 = scmp.ne.s32.totalorder %s1267_s9, %s1268_s19  ;;  %p1274_p1 = scmp.lt.s32.totalorder %s1272_s26, %s1268_s19 }
  0x1c   : > { %v442_v13 = vsel %vm396_vm0, %v395_v8, 0.0  ;;  %v436_v16 = vsel %vm396_vm0, %v393_v11, 0.0  ;;  %v390_v22 = vmul.f32 %v1439_v5, %v1475_v17  ;;  %v1492_v25 = vld [vmem:[%s1444_s28 + $0x48] sm:$0xff]  ;;  %v1499_v28 = vld [vmem:[%s1444_s28 + $0x38] sm:$0xff]  ;;  %v1504_v30 = vld [vmem:[%s1444_s28 + $0x10] sm:$0xff]  ;;  %v388_v31 = vmul.f32 %v1439_v5, %v1496_v27  ;;  %817 = vmatpush.msra.mxu1 %v748_v52 }
  0x1d   : > { %681 = vmatpush.msra.mxu0 %v610_v4  ;;  %443 = vadd.xlane.f32.xlu0 %v442_v13  ;;  %v430_v19 = vsel %vm396_vm0, %v391_v15, 0.0  ;;  %v439_v23 = vsel %vm396_vm0, %v394_v18, 0.0  ;;  %v433_v24 = vsel %vm396_vm0, %v392_v21, 0.0  ;;  %v389_v29 = vmul.f32 %v1439_v5, %v1492_v25  ;;  %v1515_v35 = vld [vmem:[%s1444_s28 + $0x30] sm:$0xff]  ;;  %v1519_v37 = vld [vmem:[%s1444_s28 + $0x28] sm:$0xff]  ;;  %v1524_v39 = vld [vmem:[%s1444_s28 + $0x18] sm:$0xff]  ;;  %p1270_p12 = pnand %p1269_p11, %p1413_p5  ;;  %p1275_p2 = por %p1274_p1, %p1273_p0 }
  0x1e   : > { %1131 = vmatmul.msk.f32.vlgmr.msra.gmra.mxu0 %vm396_vm0, %v1447_v6  ;;  %437 = vadd.xlane.f32.xlu1 %v436_v16  ;;  %v427_v26 = vsel %vm396_vm0, %v390_v22, 0.0  ;;  %v387_v32 = vmul.f32 %v1439_v5, %v1499_v28  ;;  %v421_v34 = vsel %vm396_vm0, %v388_v31, 0.0  ;;  %v386_v38 = vmul.f32 %v1439_v5, %v1515_v35  ;;  %v1527_v40 = vld [vmem:[%s1444_s28 + $0x20] sm:$0xff] }
  0x1f   : > { %431 = vadd.xlane.f32.xlu2 %v430_v19  ;;  %v424_v33 = vsel %vm396_vm0, %v389_v29, 0.0  ;;  %v385_v41 = vmul.f32 %v1439_v5, %v1519_v37  ;;  %v384_v42 = vmul.f32 %v1439_v5, %v1527_v40  ;;  %v383_v46 = vmul.f32 %v1439_v5, %v1524_v39  ;;  %v747_v53 = vld [vmem:[%s1930_s5] sm:$0xff]  ;;  %p1271_p13 = pneg %p1270_p12 }
  0x20   : > { %v418_v36 = vsel %vm396_vm0, %v387_v32, 0.0  ;;  %v415_v43 = vsel %vm396_vm0, %v386_v38, 0.0  ;;  %v382_v47 = vmul.f32 %v1439_v5, %v1504_v30  ;;  %818 = vmatpush.msra.mxu1 %v747_v53  ;;  %v1581_v54 = vld [vmem:[%s1927_s2] ss:$0 sm:$0xff]  ;;  %v381_v31 = vmul.f32 %v1439_v5, %v1481_v20 }
  0x21   : > { %v412_v44 = vsel %vm396_vm0, %v385_v41, 0.0  ;;  %v409_v45 = vsel %vm396_vm0, %v384_v42, 0.0  ;;  %v406_v48 = vsel %vm396_vm0, %v383_v46, 0.0  ;;  %v1597_v63 = vld [vmem:[%s1929_s4] ss:$0 sm:$0xff]  ;;  %p1276_p3 = pnand %p1275_p2, %p1271_p13 }
  0x22   : > { %v403_v49 = vsel %vm396_vm0, %v382_v47, 0.0  ;;  %v400_v41 = vsel %vm396_vm0, %v381_v31, 0.0 }
  0x25   : > { %440 = vadd.xlane.f32.xlu0 %v439_v23 }
  0x26   : > { %1132 = vmatmul.msk.f32.gmra.mxu0 %vm396_vm0, %v1481_v20  ;;  %434 = vadd.xlane.f32.xlu1 %v433_v24 }
  0x27   : > { %428 = vadd.xlane.f32.xlu2 %v427_v26 }
  0x2d   : > { %425 = vadd.xlane.f32.xlu0 %v424_v33 }
  0x2e   : > { %1133 = vmatmul.msk.f32.gmra.mxu0 %vm396_vm0, %v1504_v30  ;;  %422 = vadd.xlane.f32.xlu1 %v421_v34 }
  0x2f   : > { %419 = vadd.xlane.f32.xlu2 %v418_v36 }
  0x35   : > { %416 = vadd.xlane.f32.xlu0 %v415_v43 }
  0x36   : > { %1134 = vmatmul.msk.f32.gmra.mxu0 %vm396_vm0, %v1524_v39  ;;  %413 = vadd.xlane.f32.xlu1 %v412_v44 }
  0x37   : > { %410 = vadd.xlane.f32.xlu2 %v409_v45 }
  0x3d   : > { %407 = vadd.xlane.f32.xlu0 %v406_v48 }
  0x3e   : > { %1135 = vmatmul.msk.f32.gmra.mxu0 %vm396_vm0, %v1527_v40 }
  0x3f   : > { %404 = vadd.xlane.f32.xlu2 %v403_v49 }
  0x46   : > { %1136 = vmatmul.msk.f32.gmra.mxu0 %vm396_vm0, %v1519_v37 }
  0x4e   : > { %1137 = vmatmul.msk.f32.gmra.mxu0 %vm396_vm0, %v1515_v35 }
  0x56   : > { %1138 = vmatmul.msk.f32.gmra.mxu0 %vm396_vm0, %v1499_v28 }
  0x5e   : > { %1139 = vmatmul.msk.f32.gmra.mxu0 %vm396_vm0, %v1496_v27 }
  0x66   : > { %1140 = vmatmul.msk.f32.gmra.mxu0 %vm396_vm0, %v1492_v25 }
  0x6e   : > { %1141 = vmatmul.msk.f32.gmra.mxu0 %vm396_vm0, %v1475_v17 }
  0x76   : > { %1142 = vmatmul.msk.f32.gmra.mxu0 %vm396_vm0, %v1465_v12 }
  0x7e   : > { %1143 = vmatmul.msk.f32.gmra.mxu0 %vm396_vm0, %v1469_v14 }
  0x86   : > { %1144 = vmatmul.msk.f32.gmra.mxu0 %vm396_vm0, %v1457_v9 }
  0x8e   : > { %1145 = vmatmul.msk.f32.gmra.mxu0 %vm396_vm0, %v1460_v10 }
  0x90   : > { %v444_v55 = vpop.xlane.xlu0 %443 }
  0x91   : > { %v460_v56 = vmul.f32 %v444_v55, %v1450_v7  ;;  %v438_v57 = vpop.xlane.xlu1 %437 }
  0x92   : > { %v458_v58 = vmul.f32 %v438_v57, %v1457_v9  ;;  %v432_v59 = vpop.xlane.xlu2 %431 }
  0x93   : > { %v477_v60 = vadd.f32 %v1581_v54, %v460_v56  ;;  %v456_v62 = vmul.f32 %v432_v59, %v1465_v12  ;;  %v380_v56 = vmul.f32 %v1439_v5, %v1447_v6 }
  0x94   : > { %v475_v0 = vadd.f32 %v1581_v54, %v458_v58 }
  0x95   : > { %v1601_v1 = vadd.f32 %v477_v60, %v1450_v7  ;;  %v473_v2 = vadd.f32 %v1581_v54, %v456_v62 }
  0x96   : > { %1146 = vmatmul.msk.f32.gmra.mxu0 %vm396_vm0, %v1450_v7  ;;  %v1605_v3 = vadd.f32 %v475_v0, %v1457_v9 }
  0x97   : > { %v512_v8 = vmul.f32 %v1591_v61, %v1601_v1  ;;  %v1613_v16 = vadd.f32 %v473_v2, %v1465_v12  ;;  %v397_v2 = vsel %vm396_vm0, %v380_v56, 0.0 }
  0x98   : > { %v441_v13 = vpop.xlane.xlu0 %440  ;;  %v510_v15 = vmul.f32 %v1591_v61, %v1605_v3 }
  0x99   : > { %v459_v18 = vmul.f32 %v441_v13, %v1460_v10  ;;  %v558_v19 = vsel %vm396_vm0, %v512_v8, 0.0  ;;  %v435_v21 = vpop.xlane.xlu1 %434  ;;  %v508_v33 = vmul.f32 %v1591_v61, %v1613_v16 }
  0x9a   : > { %559 = vadd.xlane.f32.xlu1 %v558_v19  ;;  %v457_v23 = vmul.f32 %v435_v21, %v1469_v14  ;;  %v552_v24 = vsel %vm396_vm0, %v510_v15, 0.0  ;;  %v429_v26 = vpop.xlane.xlu2 %428 }
  0x9b   : > { %v683_v4 = vpop.f32.mrf.mxu0  ;;  %v476_v29 = vadd.f32 %v1581_v54, %v459_v18  ;;  %553 = vadd.xlane.f32.xlu2 %v552_v24  ;;  %v455_v42 = vmul.f32 %v429_v26, %v1475_v17  ;;  %v546_v46 = vsel %vm396_vm0, %v508_v33, 0.0 }
  0x9c   : > { %v684_v11 = vadd.f32 %v1597_v63, %v683_v4  ;;  %v474_v32 = vadd.f32 %v1581_v54, %v457_v23 }
  0x9d   : > { %v1627_v34 = vadd.f32 %v476_v29, %v1460_v10  ;;  %v472_v53 = vadd.f32 %v1581_v54, %v455_v42 }
  0x9e   : > { %v731_v22 = vmax.f32 %v684_v11, 0.0  ;;  %v1634_v43 = vadd.f32 %v474_v32, %v1469_v14 }
  0x9f   : > { %v511_v38 = vmul.f32 %v1591_v61, %v1627_v34  ;;  %v1656_v4 = vadd.f32 %v472_v53, %v1475_v17 }
  0xa0   : > { %1147 = vmatmul.msk.f32.vlgmr.msra.gmra.mxu1 %vm396_vm0, %v731_v22  ;;  %v426_v45 = vpop.xlane.xlu0 %425  ;;  %v509_v55 = vmul.f32 %v1591_v61, %v1634_v43 }
  0xa1   : > { %v555_v47 = vsel %vm396_vm0, %v511_v38, 0.0  ;;  %v454_v48 = vmul.f32 %v426_v45, %v1492_v25  ;;  %v423_v49 = vpop.xlane.xlu1 %422  ;;  %v507_v26 = vmul.f32 %v1591_v61, %v1656_v4 }
  0xa2   : > { %556 = vadd.xlane.f32.xlu0 %v555_v47  ;;  %401 = vadd.xlane.f32.xlu1 %v400_v41  ;;  %v453_v51 = vmul.f32 %v423_v49, %v1496_v27  ;;  %v420_v52 = vpop.xlane.xlu2 %419  ;;  %v549_v0 = vsel %vm396_vm0, %v509_v55, 0.0 }
  0xa3   : > { %v686_v36 = vpop.f32.mrf.mxu0  ;;  %v471_v57 = vadd.f32 %v1581_v54, %v454_v48  ;;  %547 = vadd.xlane.f32.xlu2 %v546_v46  ;;  %v452_v59 = vmul.f32 %v420_v52, %v1499_v28  ;;  %v543_v41 = vsel %vm396_vm0, %v507_v26, 0.0 }
  0xa4   : > { %v687_v44 = vadd.f32 %v1597_v63, %v686_v36  ;;  %v470_v58 = vadd.f32 %v1581_v54, %v453_v51 }
  0xa5   : > { %v1659_v5 = vadd.f32 %v471_v57, %v1492_v25  ;;  %v469_v21 = vadd.f32 %v1581_v54, %v452_v59 }
  0xa6   : > { %v732_v50 = vmax.f32 %v687_v44, 0.0  ;;  %v1651_v60 = vadd.f32 %v470_v58, %v1496_v27 }
  0xa7   : > { %v506_v29 = vmul.f32 %v1591_v61, %v1659_v5  ;;  %v1676_v33 = vadd.f32 %v469_v21, %v1499_v28 }
  0xa8   : > { %1148 = vmatmul.msk.f32.gmra.mxu1 %vm396_vm0, %v732_v50  ;;  %v417_v11 = vpop.xlane.xlu0 %416  ;;  %v505_v13 = vmul.f32 %v1591_v61, %v1651_v60 }
  0xa9   : > { %v451_v15 = vmul.f32 %v417_v11, %v1515_v35  ;;  %v414_v18 = vpop.xlane.xlu1 %413  ;;  %v540_v42 = vsel %vm396_vm0, %v506_v29, 0.0  ;;  %v504_v51 = vmul.f32 %v1591_v61, %v1676_v33 }
  0xaa   : > { %550 = vadd.xlane.f32.xlu1 %v549_v0  ;;  %398 = vadd.xlane.f32.xlu0 %v397_v2  ;;  %v537_v22 = vsel %vm396_vm0, %v505_v13, 0.0  ;;  %v450_v23 = vmul.f32 %v414_v18, %v1519_v37  ;;  %v411_v24 = vpop.xlane.xlu2 %410 }
  0xab   : > { %v689_v62 = vpop.f32.mrf.mxu0  ;;  %v468_v31 = vadd.f32 %v1581_v54, %v451_v15  ;;  %538 = vadd.xlane.f32.xlu2 %v537_v22  ;;  %v449_v44 = vmul.f32 %v411_v24, %v1527_v40 }
  0xac   : > { %v690_v8 = vadd.f32 %v1597_v63, %v689_v62  ;;  %v467_v32 = vadd.f32 %v1581_v54, %v450_v23  ;;  %v534_v62 = vsel %vm396_vm0, %v504_v51, 0.0 }
  0xad   : > { %v1685_v45 = vadd.f32 %v468_v31, %v1515_v35  ;;  %v466_v55 = vadd.f32 %v1581_v54, %v449_v44 }
  0xae   : > { %v733_v19 = vmax.f32 %v690_v8, 0.0  ;;  %v1679_v36 = vadd.f32 %v467_v32, %v1519_v37 }
  0xaf   : > { %v503_v56 = vmul.f32 %v1591_v61, %v1685_v45  ;;  %v1704_v8 = vadd.f32 %v466_v55, %v1527_v40 }
  0xb0   : > { %1149 = vmatmul.msk.f32.gmra.mxu1 %vm396_vm0, %v733_v19  ;;  %v408_v47 = vpop.xlane.xlu0 %407  ;;  %v502_v48 = vmul.f32 %v1591_v61, %v1679_v36 }
  0xb1   : > { %v448_v49 = vmul.f32 %v408_v47, %v1524_v39  ;;  %v531_v2 = vsel %vm396_vm0, %v503_v56, 0.0  ;;  %v501_v21 = vmul.f32 %v1591_v61, %v1704_v8 }
  0xb2   : > { %544 = vadd.xlane.f32.xlu0 %v543_v41  ;;  %541 = vadd.xlane.f32.xlu1 %v540_v42  ;;  %v528_v52 = vsel %vm396_vm0, %v502_v48, 0.0  ;;  %v405_v53 = vpop.xlane.xlu2 %404 }
  0xb3   : > { %v692_v38 = vpop.f32.mrf.mxu0  ;;  %v465_v57 = vadd.f32 %v1581_v54, %v448_v49  ;;  %529 = vadd.xlane.f32.xlu2 %v528_v52  ;;  %v447_v58 = vmul.f32 %v405_v53, %v1504_v30  ;;  %v525_v26 = vsel %vm396_vm0, %v501_v21, 0.0 }
  0xb4   : > { %v693_v46 = vadd.f32 %v1597_v63, %v692_v38 }
  0xb5   : > { %v464_v59 = vadd.f32 %v1581_v54, %v447_v58  ;;  %v1707_v11 = vadd.f32 %v465_v57, %v1524_v39 }
  0xb6   : > { %v734_v50 = vmax.f32 %v693_v46, 0.0 }
  0xb7   : > { %v1710_v13 = vadd.f32 %v464_v59, %v1504_v30  ;;  %v500_v22 = vmul.f32 %v1591_v61, %v1707_v11 }
  0xb8   : > { %1150 = vmatmul.msk.f32.gmra.mxu1 %vm396_vm0, %v734_v50 }
  0xb9   : > { %v499_v18 = vmul.f32 %v1591_v61, %v1710_v13  ;;  %v522_v29 = vsel %vm396_vm0, %v500_v22, 0.0 }
  0xba   : > { %535 = vadd.xlane.f32.xlu0 %v534_v62  ;;  %532 = vadd.xlane.f32.xlu1 %v531_v2 }
  0xbb   : > { %v695_v0 = vpop.f32.mrf.mxu0  ;;  %v519_v23 = vsel %vm396_vm0, %v499_v18, 0.0 }
  0xbc   : > { %v696_v15 = vadd.f32 %v1597_v63, %v695_v0  ;;  %520 = vadd.xlane.f32.xlu2 %v519_v23 }
  0xbe   : > { %v735_v19 = vmax.f32 %v696_v15, 0.0 }
  0xc0   : > { %1151 = vmatmul.msk.f32.gmra.mxu1 %vm396_vm0, %v735_v19 }
  0xc2   : > { %526 = vadd.xlane.f32.xlu0 %v525_v26  ;;  %523 = vadd.xlane.f32.xlu1 %v522_v29  ;;  %v1746_v26 = vld [vmem:[%s1927_s2 + $0x1] ss:$0 sm:$0xff] }
  0xc3   : > { %v698_v24 = vpop.f32.mrf.mxu0 }
  0xc4   : > { %v699_v31 = vadd.f32 %v1597_v63, %v698_v24 }
  0xc6   : > { %v736_v32 = vmax.f32 %v699_v31, 0.0 }
  0xc8   : > { %1152 = vmatmul.msk.f32.gmra.mxu1 %vm396_vm0, %v736_v32 }
  0xcb   : > { %v701_v38 = vpop.f32.mrf.mxu0 }
  0xcc   : > { %v702_v41 = vadd.f32 %v1597_v63, %v701_v38 }
  0xce   : > { %v737_v42 = vmax.f32 %v702_v41, 0.0 }
  0xd0   : > { %1153 = vmatmul.msk.f32.gmra.mxu1 %vm396_vm0, %v737_v42 }
  0xd3   : > { %v704_v44 = vpop.f32.mrf.mxu0 }
  0xd4   : > { %v705_v46 = vadd.f32 %v1597_v63, %v704_v44 }
  0xd6   : > { %v738_v47 = vmax.f32 %v705_v46, 0.0 }
  0xd8   : > { %1154 = vmatmul.msk.f32.gmra.mxu1 %vm396_vm0, %v738_v47 }
  0xdb   : > { %v707_v48 = vpop.f32.mrf.mxu0 }
  0xdc   : > { %v708_v49 = vadd.f32 %v1597_v63, %v707_v48 }
  0xde   : > { %v739_v50 = vmax.f32 %v708_v49, 0.0 }
  0xe0   : > { %1155 = vmatmul.msk.f32.gmra.mxu1 %vm396_vm0, %v739_v50 }
  0xe3   : > { %v710_v51 = vpop.f32.mrf.mxu0 }
  0xe4   : > { %v711_v52 = vadd.f32 %v1597_v63, %v710_v51 }
  0xe6   : > { %v740_v53 = vmax.f32 %v711_v52, 0.0 }
  0xe8   : > { %1156 = vmatmul.msk.f32.gmra.mxu1 %vm396_vm0, %v740_v53 }
  0xeb   : > { %v713_v55 = vpop.f32.mrf.mxu0 }
  0xec   : > { %v714_v56 = vadd.f32 %v1597_v63, %v713_v55 }
  0xee   : > { %v741_v57 = vmax.f32 %v714_v56, 0.0 }
  0xf0   : > { %1157 = vmatmul.msk.f32.gmra.mxu1 %vm396_vm0, %v741_v57 }
  0xf3   : > { %v716_v58 = vpop.f32.mrf.mxu0 }
  0xf4   : > { %v717_v59 = vadd.f32 %v1597_v63, %v716_v58 }
  0xf6   : > { %v742_v62 = vmax.f32 %v717_v59, 0.0 }
  0xf8   : > { %1158 = vmatmul.msk.f32.gmra.mxu1 %vm396_vm0, %v742_v62 }
  0xfb   : > { %v719_v0 = vpop.f32.mrf.mxu0 }
  0xfc   : > { %v720_v2 = vadd.f32 %v1597_v63, %v719_v0 }
  0xfe   : > { %v743_v15 = vmax.f32 %v720_v2, 0.0 }
 0x100   : > { %1159 = vmatmul.msk.f32.gmra.mxu1 %vm396_vm0, %v743_v15 }
 0x103   : > { %v722_v18 = vpop.f32.mrf.mxu0 }
 0x104   : > { %v723_v19 = vadd.f32 %v1597_v63, %v722_v18 }
 0x106   : > { %v744_v21 = vmax.f32 %v723_v19, 0.0 }
 0x108   : > { %1160 = vmatmul.msk.f32.gmra.mxu1 %vm396_vm0, %v744_v21 }
 0x10b   : > { %v725_v22 = vpop.f32.mrf.mxu0 }
 0x10c   : > { %v726_v23 = vadd.f32 %v1597_v63, %v725_v22 }
 0x10d   : > { %v560_v29 = vpop.xlane.xlu1 %559 }
 0x10e   : > { %v745_v24 = vmax.f32 %v726_v23, 0.0  ;;  %v576_v31 = vmul.f32 %v560_v29, %v1450_v7  ;;  %v554_v38 = vpop.xlane.xlu2 %553 }
 0x10f   : > { %v574_v47 = vmul.f32 %v554_v38, %v1457_v9 }
 0x110   : > { %1161 = vmatmul.msk.f32.gmra.mxu1 %vm396_vm0, %v745_v24  ;;  %v593_v41 = vadd.f32 %v1746_v26, %v576_v31 }
 0x112   : > { %v609_v46 = vadd.f32 %v593_v41, %v1601_v1 }
 0x113   : > { %v728_v32 = vpop.f32.mrf.mxu0 }
 0x114   : > { %v729_v42 = vadd.f32 %v1597_v63, %v728_v32  ;;  %1180 = vmatpush.xpose.msk.msra.mxu3 %vm396_vm0, %v609_v46  ;;  %v591_v63 = vadd.f32 %v1746_v26, %v574_v47 }
 0x115   : > { %v557_v48 = vpop.xlane.xlu0 %556  ;;  %v402_v49 = vpop.xlane.xlu1 %401 }
 0x116   : > { %v746_v44 = vmax.f32 %v729_v42, 0.0  ;;  %v575_v50 = vmul.f32 %v557_v48, %v1460_v10  ;;  %v446_v7 = vmul.f32 %v402_v49, %v1481_v20  ;;  %v548_v1 = vpop.xlane.xlu2 %547  ;;  %v607_v10 = vadd.f32 %v591_v63, %v1605_v3 }
 0x117   : > { %v572_v57 = vmul.f32 %v548_v1, %v1465_v12 }
 0x118   : > { %1162 = vmatmul.msk.f32.gmra.mxu1 %vm396_vm0, %v746_v44  ;;  %v592_v51 = vadd.f32 %v1746_v26, %v575_v50  ;;  %v463_v52 = vadd.f32 %v1581_v54, %v446_v7 }
 0x119   : > { %v589_v18 = vadd.f32 %v1746_v26, %v572_v57 }
 0x11a   : > { %v608_v55 = vadd.f32 %v592_v51, %v1627_v34  ;;  %v1764_v56 = vadd.f32 %v463_v52, %v1481_v20 }
 0x11b   : > { %v605_v21 = vadd.f32 %v589_v18, %v1613_v16 }
 0x11c   : > { %1181 = vmatpush.xpose.msk.msra.mxu3 %vm396_vm0, %v608_v55  ;;  %v498_v9 = vmul.f32 %v1591_v61, %v1764_v56 }
 0x11d   : > { %v1760_v53 = vpop.f32.mrf.mxu1  ;;  %v551_v58 = vpop.xlane.xlu1 %550 }
 0x11e   : > { %v399_v59 = vpop.xlane.xlu0 %398  ;;  %v573_v62 = vmul.f32 %v551_v58, %v1469_v14  ;;  %v516_v34 = vsel %vm396_vm0, %v498_v9, 0.0  ;;  %v539_v22 = vpop.xlane.xlu2 %538 }
 0x11f   : > { %v445_v0 = vmul.f32 %v399_v59, %v1447_v6  ;;  %517 = vadd.xlane.f32.xlu0 %v516_v34 }
 0x120   : > { %v590_v2 = vadd.f32 %v1746_v26, %v573_v62  ;;  %1182 = vmatpush.xpose.msk.msra.mxu3 %vm396_vm0, %v607_v10 }
 0x121   : > { %v462_v15 = vadd.f32 %v1581_v54, %v445_v0 }
 0x122   : > { %v606_v12 = vadd.f32 %v590_v2, %v1634_v43 }
 0x123   : > { %v1782_v19 = vadd.f32 %v462_v15, %v1447_v6  ;;  %v1837_v15 = vld [vmem:[%s1931_s6] ss:$0 sm:$0xff] }
 0x124   : > { %1183 = vmatpush.xpose.msk.msra.mxu3 %vm396_vm0, %v606_v12 }
 0x125   : > { %v1778_v3 = vpop.f32.mrf.mxu1  ;;  %v497_v14 = vmul.f32 %v1591_v61, %v1782_v19  ;;  %v542_v23 = vpop.xlane.xlu1 %541  ;;  %v569_v61 = vmul.f32 %v539_v22, %v1496_v27 }
 0x126   : > { %v545_v54 = vpop.xlane.xlu0 %544  ;;  %v570_v31 = vmul.f32 %v542_v23, %v1492_v25 }
 0x127   : > { %v571_v24 = vmul.f32 %v545_v54, %v1475_v17  ;;  %v513_v29 = vsel %vm396_vm0, %v497_v14, 0.0  ;;  %v586_v17 = vadd.f32 %v1746_v26, %v569_v61 }
 0x128   : > { %514 = vadd.xlane.f32.xlu1 %v513_v29  ;;  %1184 = vmatpush.xpose.msk.msra.mxu3 %vm396_vm0, %v605_v21  ;;  %v587_v32 = vadd.f32 %v1746_v26, %v570_v31 }
 0x129   : > { %v588_v43 = vadd.f32 %v1746_v26, %v571_v24  ;;  %v602_v27 = vadd.f32 %v586_v17, %v1651_v60 }
 0x12a   : > { %v603_v41 = vadd.f32 %v587_v32, %v1659_v5 }
 0x12b   : > { %v604_v16 = vadd.f32 %v588_v43, %v1656_v4  ;;  %v530_v4 = vpop.xlane.xlu2 %529 }
 0x12c   : > { %v566_v50 = vmul.f32 %v530_v4, %v1519_v37  ;;  %v1029_v4 = vld [vmem:[#allocation2] sm:$0x1] }
 0x12d   : > { %v1795_v38 = vpop.f32.mrf.mxu1  ;;  %1185 = vmatpush.xpose.msk.msra.mxu3 %vm396_vm0, %v604_v16  ;;  %v533_v42 = vpop.xlane.xlu1 %532 }
 0x12e   : > { %v536_v25 = vpop.xlane.xlu0 %535  ;;  %v567_v47 = vmul.f32 %v533_v42, %v1515_v35  ;;  %v583_v7 = vadd.f32 %v1746_v26, %v566_v50 }
 0x12f   : > { %v568_v44 = vmul.f32 %v536_v25, %v1499_v28 }
 0x130   : > { %v584_v49 = vadd.f32 %v1746_v26, %v567_v47  ;;  %v599_v37 = vadd.f32 %v583_v7, %v1679_v36  ;;  %v884_v47 = vld [vmem:[%s1932_s7] sm:$0xff] }
 0x131   : > { %1186 = vmatpush.xpose.msk.msra.mxu3 %vm396_vm0, %v603_v41  ;;  %v585_v46 = vadd.f32 %v1746_v26, %v568_v44 }
 0x132   : > { %v600_v60 = vadd.f32 %v584_v49, %v1685_v45  ;;  %v1316_v49 = vmov 0  }
 0x133   : > { %v601_v5 = vadd.f32 %v585_v46, %v1676_v33  ;;  %v521_v1 = vpop.xlane.xlu2 %520  ;;  %1240 = vset.pattern.permute.xlu2 %v1316_v49  ;;  %1241 = vset.pattern.permute.xlu0 %v1316_v49 }
 0x134   : > { %1032 = vperm.xlu2 %1240, %v1029_v4  }
 0x135   : > { %v1806_v48 = vpop.f32.mrf.mxu1  ;;  %1187 = vmatpush.xpose.msk.msra.mxu3 %vm396_vm0, %v602_v27  ;;  %v524_v52 = vpop.xlane.xlu1 %523 }
 0x136   : > { %v527_v28 = vpop.xlane.xlu0 %526  ;;  %v564_v33 = vmul.f32 %v524_v52, %v1524_v39  ;;  %v827_v52 = vadd.f32 %v1837_v15, %v1795_v38  ;;  %v885_v38 = vld [vmem:[%s1933_s8] sm:$0xff] }
 0x137   : > { %v565_v35 = vmul.f32 %v527_v28, %v1527_v40  ;;  %v563_v40 = vmul.f32 %v521_v1, %v1504_v30 }
 0x138   : > { %v581_v55 = vadd.f32 %v1746_v26, %v564_v33  ;;  %v824_v33 = vadd.f32 %v1837_v15, %v1778_v3 }
 0x139   : > { %1188 = vmatpush.xpose.msk.msra.mxu3 %vm396_vm0, %v601_v5  ;;  %v582_v63 = vadd.f32 %v1746_v26, %v565_v35  ;;  %v580_v10 = vadd.f32 %v1746_v26, %v563_v40 }
 0x13a   : > { %v597_v57 = vadd.f32 %v581_v55, %v1707_v11  ;;  %v869_v1 = vmax.f32 %v824_v33, 0.0 }
 0x13b   : > { %v598_v45 = vadd.f32 %v582_v63, %v1704_v8  ;;  %v596_v39 = vadd.f32 %v580_v10, %v1710_v13 }
 0x13d   : > { %v1816_v51 = vpop.f32.mrf.mxu1  ;;  %1189 = vmatpush.xpose.msk.msra.mxu3 %vm396_vm0, %v600_v60  ;;  %v830_v60 = vadd.f32 %v1837_v15, %v1806_v48 }
 0x13e   : > { %v833_v28 = vadd.f32 %v1837_v15, %v1816_v51  ;;  %v821_v51 = vadd.f32 %v1837_v15, %v1760_v53 }
 0x13f   : > { %v871_v63 = vmax.f32 %v830_v60, 0.0 }
 0x140   : > { %v872_v35 = vmax.f32 %v833_v28, 0.0  ;;  %v868_v48 = vmax.f32 %v821_v51, 0.0 }
 0x141   : > { %1190 = vmatpush.xpose.msk.msra.mxu3 %vm396_vm0, %v599_v37  ;;  %v870_v37 = vmax.f32 %v827_v52, 0.0 }
 0x145   : > { %v1826_v9 = vpop.f32.mrf.mxu1  ;;  %1191 = vmatpush.xpose.msk.msra.mxu3 %vm396_vm0, %v598_v45 }
 0x146   : > { %v836_v5 = vadd.f32 %v1837_v15, %v1826_v9 }
 0x148   : > { %v873_v7 = vmax.f32 %v836_v5, 0.0 }
 0x149   : > { %1192 = vmatpush.xpose.msk.msra.mxu3 %vm396_vm0, %v597_v57 }
 0x14d   : > { %v838_v36 = vpop.f32.mrf.mxu1  ;;  %1193 = vmatpush.xpose.msk.msra.mxu3 %vm396_vm0, %v596_v39 }
 0x14e   : > { %v839_v46 = vadd.f32 %v1837_v15, %v838_v36 }
 0x150   : > { %v874_v50 = vmax.f32 %v839_v46, 0.0 }
 0x155   : > { %v841_v58 = vpop.f32.mrf.mxu1 }
 0x156   : > { %v842_v42 = vadd.f32 %v1837_v15, %v841_v58 }
 0x158   : > { %v875_v27 = vmax.f32 %v842_v42, 0.0 }
 0x15d   : > { %v844_v59 = vpop.f32.mrf.mxu1 }
 0x165   : > { %v847_v8 = vpop.f32.mrf.mxu1 }
 0x16d   : > { %v850_v62 = vpop.f32.mrf.mxu1 }
 0x16e   : > { %v851_v17 = vadd.f32 %v1837_v15, %v850_v62 }
 0x170   : > { %v878_v25 = vmax.f32 %v851_v17, 0.0 }
 0x175   : > { %v853_v30 = vpop.f32.mrf.mxu1 }
 0x17d   : > { %v856_v0 = vpop.f32.mrf.mxu1 }
 0x17e   : > { %v857_v31 = vadd.f32 %v1837_v15, %v856_v0 }
 0x180   : > { %v880_v16 = vmax.f32 %v857_v31, 0.0 }
 0x185   : > { %v859_v34 = vpop.f32.mrf.mxu1 }
 0x186   : > { %v860_v23 = vadd.f32 %v1837_v15, %v859_v34 }
 0x188   : > { %v881_v43 = vmax.f32 %v860_v23, 0.0 }
 0x18d   : > { %v862_v2 = vpop.f32.mrf.mxu1 }
 0x18e   : > { %v863_v14 = vadd.f32 %v1837_v15, %v862_v2  ;;  %v1033_v3 = vpop.permute.xlu2 %1032 }
 0x18f   : > { %v1035_v45 = vperm.slane %v1033_v3, 0 }
 0x190   : > { %v882_v24 = vmax.f32 %v863_v14, 0.0 }
 0x192   : > { %v518_v13 = vpop.xlane.xlu0 %517 }
 0x193   : > { %v562_v12 = vmul.f32 %v518_v13, %v1481_v20 }
 0x195   : > { %v865_v11 = vpop.f32.mrf.mxu1  ;;  %v579_v22 = vadd.f32 %v1746_v26, %v562_v12 }
 0x196   : > { %v866_v18 = vadd.f32 %v1837_v15, %v865_v11 }
 0x197   : > { %v595_v54 = vadd.f32 %v579_v22, %v1764_v56  ;;  %v854_v56 = vadd.f32 %v1837_v15, %v853_v30 }
 0x198   : > { %v883_v21 = vmax.f32 %v866_v18, 0.0 }
 0x199   : > { %1194 = vmatpush.xpose.msk.msra.mxu3 %vm396_vm0, %v595_v54  ;;  %v879_v41 = vmax.f32 %v854_v56, 0.0 }
 0x19a   : > { %1163 = vmatpush.xpose.msk.msra.mxu2 %vm886_vm1, %v883_v21 }
 0x19b   : > { %v515_v29 = vpop.xlane.xlu1 %514 }
 0x19c   : > { %v561_v20 = vmul.f32 %v515_v29, %v1447_v6  ;;  %v848_v6 = vadd.f32 %v1837_v15, %v847_v8 }
 0x19e   : > { %1164 = vmatpush.xpose.msk.msra.mxu2 %vm886_vm1, %v882_v24  ;;  %v578_v32 = vadd.f32 %v1746_v26, %v561_v20  ;;  %v845_v26 = vadd.f32 %v1837_v15, %v844_v59 }
 0x1a0   : > { %v594_v61 = vadd.f32 %v578_v32, %v1782_v19  ;;  %v877_v19 = vmax.f32 %v848_v6, 0.0  ;;  %v876_v44 = vmax.f32 %v845_v26, 0.0 }
 0x1a2   : > { %1165 = vmatpush.xpose.msk.msra.mxu2 %vm886_vm1, %v881_v43  ;;  %1195 = vmatpush.xpose.msk.msra.mxu3 %vm396_vm0, %v594_v61 }
 0x1a5   : > { %1196 = vmatmul.msk.f32.vlgmr.msra.gmra.mxu3 %vm396_vm0, %v884_v47 }
 0x1a6   : > { %1166 = vmatpush.xpose.msk.msra.mxu2 %vm886_vm1, %v880_v16 }
 0x1aa   : > { %1167 = vmatpush.xpose.msk.msra.mxu2 %vm886_vm1, %v879_v41 }
 0x1ae   : > { %1168 = vmatpush.xpose.msk.msra.mxu2 %vm886_vm1, %v878_v25 }
 0x1b2   : > { %1169 = vmatpush.xpose.msk.msra.mxu2 %vm886_vm1, %v877_v19 }
 0x1b6   : > { %1170 = vmatpush.xpose.msk.msra.mxu2 %vm886_vm1, %v876_v44 }
 0x1ba   : > { %1171 = vmatpush.xpose.msk.msra.mxu2 %vm886_vm1, %v875_v27 }
 0x1be   : > { %1172 = vmatpush.xpose.msk.msra.mxu2 %vm886_vm1, %v874_v50 }
 0x1c2   : > { %1173 = vmatpush.xpose.msk.msra.mxu2 %vm886_vm1, %v873_v7 }
 0x1c6   : > { %1174 = vmatpush.xpose.msk.msra.mxu2 %vm886_vm1, %v872_v35 }
 0x1ca   : > { %1175 = vmatpush.xpose.msk.msra.mxu2 %vm886_vm1, %v871_v63 }
 0x1ce   : > { %1176 = vmatpush.xpose.msk.msra.mxu2 %vm886_vm1, %v870_v37 }
 0x1d2   : > { %1177 = vmatpush.xpose.msk.msra.mxu2 %vm886_vm1, %v869_v1 }
 0x1d6   : > { %1178 = vmatpush.xpose.msk.msra.mxu2 %vm886_vm1, %v868_v48 }
 0x1d9   : > { %1179 = vmatmul.msk.f32.vlgmr.msra.gmra.mxu2 %vm886_vm1, %v885_v38 }
 0x228   : > { %v1026_v55 = vpop.f32.mrf.mxu3 }
 0x25c   : > { %v955_v40 = vpop.f32.mrf.mxu2 }
 0x25d   : > { %v1027_v9 = vadd.f32 %v1026_v55, %v955_v40 }
 0x25f   : > { %v1036_v53 = vadd.f32 %v1035_v45, %v1027_v9 }
 0x261   : > { %v1197_v10 = vmul.f32 -1.442695, %v1036_v53 }
 0x263   : > { %1248 = vpow2.f32 %v1197_v10 }
 0x269   : > { %v1249_v57 = vpop.eup %1248 }
 0x26a   : > { %v1040_v39 = vadd.f32 1.0, %v1249_v57 }
 0x26c   : > { %1250 = vrcp.f32 %v1040_v39  ;;  %v1052_v8 = vand.u32 2147483648, %v1040_v39  ;;  %v1050_v30 = vand.u32 2147483647, %v1040_v39  ;;  %vm1046_vm3 = vweird.f32 %v1040_v39 }
 0x26e   : > { %v1053_v34 = vor.u32 1.1754944e-38, %v1052_v8  ;;  %vm1051_vm5 = vcmp.eq.f32.partialorder %v1050_v30, 8.507059e+37 }
 0x272   : > { %v1251_v36 = vpop.eup %1250 }
 0x273   : > { %v1042_v58 = vmul.f32 %v1251_v36, %v1040_v39  ;;  %vm1047_vm2 = vweird.f32 %v1251_v36 }
 0x274   : > { %vm1048_vm4 = vmor %vm1046_vm3, %vm1047_vm2 }
 0x275   : > { %v1043_v59 = vsub.f32 1.0, %v1042_v58 }
 0x277   : > { %v1044_v62 = vmul.f32 %v1251_v36, %v1043_v59 }
 0x279   : > { %v1045_v0 = vadd.f32 %v1251_v36, %v1044_v62 }
 0x27b   : > { %v1049_v2 = vsel %vm1048_vm4, %v1251_v36, %v1045_v0 }
 0x27c   : > { %v1054_v15 = vsel %vm1051_vm5, %v1053_v34, %v1049_v2 }
 0x27d   : > { %1056 = vst [vmem:[%s354_s11] sm:$0x1] %v1054_v15 }
 0x27e   : > { %1279 = shalt.err (!%p1276_p3)
}
 0x27f   : > { %1200 = dma.vmem_to_hbm [thread:$0]  (%p1413_p5), %s1069_s12, 16, %s1071_s13, %s1058_s14  }
 0x280 PF: > { %p1206_p4 = scmp.ge.s32.totalorder %s1314_s18, 2  ;;  %s1082_s27 = sand.u32 1, %s1302_s15  }
 0x281   : > { %s1083_s30 = scalar_lea.sflag [#allocation4], %s1082_s27 }
 0x282   : > { %p1203_p7 = pnand %p1206_p4, %p1417_p6 }
 0x284   : > { %p1204_p8 = pneg %p1203_p7 }
 0x286   : > { %1297 = dma.done.wait (%p1204_p8), %s1083_s30, 16  }
 0x287   : > { %1299 = vsyncadd (%p1204_p8), %s1083_s30, 4294967280  ;;  %p22_p9 = scmp.ge.s32.totalorder %s1400_s20, 5   ;;  %s1938_s15 = smov %s1306_s16 }
 0x288   : > { %s1939_s16 = smov %s1310_s17  ;;  %s1940_s17 = smov %s1411_s23 }
 0x289   : > { %s1941_s18 = smov %s1400_s20  ;;  %24 = sbr.rel (!%p22_p9) target bundleno = 6 (0x6), region = 95 }
 0x28e   :  { %1088 = vsyncpa [#allocation4], 1 }
 0x28f   :  { %1090 = vsyncpa [#allocation4 + $0x1], 1 }

</bundles_post_ra>
